<compile_context>
chip_gen: v6e
topology: v6e:2x2x1
jax: 0.10.0
libtpu: 0.0.40
codegen_flags: <defaults>
</compile_context>

<pallas_src>
import jax
import jax.numpy as jnp
import numpy as np
from jax import lax
from jax.experimental import pallas as pl
from jax.experimental.pallas import tpu as pltpu

STATE_DIM = 17      # HalfCheetah-v4 observation dim
ACTION_DIM = 6      # HalfCheetah-v4 action dim
HIDDEN = 512
T_STEPS = 25

SA_DIM = STATE_DIM + ACTION_DIM     # 23
SA_PAD = 128                        # padded K for the layer-1 state/action block
T_PAD = 32                          # padded (folded) embedding-table rows
OUT_PAD = 128                       # lane-dense padded output width
D_IN = SA_DIM + HIDDEN              # 535 (original layer-1 fan-in)


def _round_up(x, m):
    return (x + m - 1) // m * m


def _layer1(xsa_ref, t_ref, embw1_ref, w1sa_ref):
    """ReLU(x @ W1 + b1) with the embedding gather fused as a one-hot matmul.

    embw1_ref already contains embed @ W1_embed_rows + b1 (folded offline, f32),
    so selecting row t of it IS the embedding contribution plus the bias.
    If t falls outside [0, T_STEPS) the one-hot selects a zero padded row
    (silent, matches previous behavior).
    """
    tb = xsa_ref.shape[0]
    t = t_ref[...]                                                   # (TB, 1) int32
    steps = lax.broadcasted_iota(jnp.int32, (tb, T_PAD), 1)          # (TB, 32)
    onehot = (steps == t).astype(jnp.float32)                        # (TB, 32)
    h1 = jnp.dot(onehot, embw1_ref[...], preferred_element_type=jnp.float32)
    h1 = h1 + jnp.dot(xsa_ref[...], w1sa_ref[...],
                      preferred_element_type=jnp.float32)
    return jnp.maximum(h1, 0.0).astype(jnp.bfloat16)


def _actor_kernel_overlap(xsa_ref, t_ref, embw1_ref, w1sa_ref, w2_hbm, b2_ref,
                          w3_hbm, b3_ref, o_ref, w2_vmem, w3_vmem, dma_sem):
    """grid == 1 path: w2/w3 fetched manually so their DMA hides under layer-1 compute."""
    w2_cp = pltpu.make_async_copy(w2_hbm, w2_vmem, dma_sem.at[0])
    w3_cp = pltpu.make_async_copy(w3_hbm, w3_vmem, dma_sem.at[1])
    w2_cp.start()
    w3_cp.start()

    h1 = _layer1(xsa_ref, t_ref, embw1_ref, w1sa_ref)

    w2_cp.wait()
    h2 = jnp.dot(h1, w2_vmem[...], preferred_element_type=jnp.float32) + b2_ref[...]
    h2 = jnp.maximum(h2, 0.0).astype(jnp.bfloat16)

    w3_cp.wait()
    # Lane-dense (TB, 128) output; caller slices [:, :6].
    o_ref[...] = jnp.dot(h2, w3_vmem[...], preferred_element_type=jnp.float32) + b3_ref[...]


def _actor_kernel_resident(xsa_ref, t_ref, embw1_ref, w1sa_ref, w2_ref, b2_ref,
                           w3_ref, b3_ref, o_ref):
    """grid > 1 path: constant-index BlockSpecs keep all weights resident in VMEM."""
    h1 = _layer1(xsa_ref, t_ref, embw1_ref, w1sa_ref)
    h2 = jnp.dot(h1, w2_ref[...], preferred_element_type=jnp.float32) + b2_ref[...]
    h2 = jnp.maximum(h2, 0.0).astype(jnp.bfloat16)
    o_ref[...] = jnp.dot(h2, w3_ref[...], preferred_element_type=jnp.float32) + b3_ref[...]


def prepare_kernel_params(params):
    """One-time conversion of f32 PyTorch-layout params to the padded kernel layout."""
    f32, bf16 = jnp.float32, jnp.bfloat16
    w1 = params["w1"].astype(f32)                                     # (535, 512)
    # Fold the embedding table through W1's embedding rows and add b1 (exact: one
    # one-hot row is selected per sample).  Kept f32 -> no extra rounding on this path.
    emb_w1 = params["embed"].astype(f32) @ w1[SA_DIM:] + params["b1"].astype(f32)
    emb_w1 = jnp.zeros((T_PAD, HIDDEN), f32).at[:T_STEPS].set(emb_w1)
    w1sa = jnp.zeros((SA_PAD, HIDDEN), f32).at[:SA_DIM].set(w1[:SA_DIM]).astype(bf16)
    w3 = jnp.zeros((HIDDEN, OUT_PAD), f32).at[:, :ACTION_DIM].set(params["w3"]).astype(bf16)
    b3 = jnp.zeros((1, OUT_PAD), f32).at[:, :ACTION_DIM].set(params["b3"])
    return {
        "emb_w1": emb_w1,                      # (32, 512) f32  (embed@W1e + b1, padded rows)
        "w1sa": w1sa,                          # (128, 512) bf16 (state/action rows, padded)
        "w2": params["w2"].astype(bf16),       # (512, 512) bf16
        "b2": params["b2"].astype(f32),        # (1, 512) f32
        "w3": w3,                              # (512, 128) bf16 (output padded)
        "b3": b3,                              # (1, 128) f32
    }


def diffusion_actor_forward(kparams, state, action_noise, t):
    """Pallas implementation of DiffusionActor.forward -> (B, ACTION_DIM) f32."""
    B = state.shape[0]
    if B < 128:
        TB = _round_up(max(B, 1), 8)           # single-block inference path
    elif B < 256:
        TB = 128
    elif B < 1024:
        TB = 256                               # fills v6e/v7x 256-wide MXU, grid>=2 for B>=512
    else:
        TB = 512
    B_pad = _round_up(B, TB)
    grid = (B_pad // TB,)

    # Tiny state/action slab, zero-padded once to an aligned 128-wide bf16 K block.
    xsa = jnp.zeros((B_pad, SA_PAD), jnp.bfloat16)
    xsa = xsa.at[:B, :STATE_DIM].set(state.astype(jnp.bfloat16))
    xsa = xsa.at[:B, STATE_DIM:SA_DIM].set(action_noise.astype(jnp.bfloat16))
    t_pad = jnp.zeros((B_pad, 1), jnp.int32).at[:B, 0].set(t.astype(jnp.int32))

    batch_spec = lambda shape: pl.BlockSpec(shape, lambda i: (i, 0))
    const_spec = lambda shape: pl.BlockSpec(shape, lambda i: (0, 0))   # weight stays resident

    flops = 2 * B_pad * (T_PAD * HIDDEN + SA_PAD * HIDDEN
                         + HIDDEN * HIDDEN + HIDDEN * OUT_PAD)
    weight_bytes = (2 * (SA_PAD * HIDDEN + HIDDEN * HIDDEN + HIDDEN * OUT_PAD)
                    + 4 * (T_PAD * HIDDEN + HIDDEN + OUT_PAD))
    act_bytes = B_pad * (2 * SA_PAD + 4 + 4 * OUT_PAD)
    cost = pl.CostEstimate(flops=flops, transcendentals=0,
                           bytes_accessed=weight_bytes + act_bytes)

    head_specs = [
        batch_spec((TB, SA_PAD)),        # state+action (bf16, padded)
        batch_spec((TB, 1)),             # t indices
        const_spec((T_PAD, HIDDEN)),     # folded embed@W1 + b1 (f32)
        const_spec((SA_PAD, HIDDEN)),    # w1 state/action rows (bf16, padded)
    ]
    args = (xsa, t_pad, kparams["emb_w1"], kparams["w1sa"],
            kparams["w2"], kparams["b2"], kparams["w3"], kparams["b3"])
    out_shape = jax.ShapeDtypeStruct((B_pad, OUT_PAD), jnp.float32)
    out_spec = batch_spec((TB, OUT_PAD))

    if grid[0] == 1:
        # Inference path: overlap w2/w3 HBM->VMEM DMA with layer-1 compute.
        out = pl.pallas_call(
            _actor_kernel_overlap,
            out_shape=out_shape,
            grid_spec=pltpu.PrefetchScalarGridSpec(
                num_scalar_prefetch=0,
                grid=grid,
                in_specs=head_specs + [
                    pl.BlockSpec(memory_space=pl.ANY),   # w2 raw HBM ref
                    const_spec((1, HIDDEN)),             # b2
                    pl.BlockSpec(memory_space=pl.ANY),   # w3 raw HBM ref
                    const_spec((1, OUT_PAD)),            # b3
                ],
                out_specs=out_spec,
                scratch_shapes=[
                    pltpu.VMEM((HIDDEN, HIDDEN), jnp.bfloat16),   # w2 landing buffer
                    pltpu.VMEM((HIDDEN, OUT_PAD), jnp.bfloat16),  # w3 landing buffer
                    pltpu.SemaphoreType.DMA((2,)),
                ]),
            compiler_params=pltpu.CompilerParams(
                dimension_semantics=("arbitrary",)),
            cost_estimate=cost,
        )(*args)
    else:
        # Batched path: weights resident across batch blocks, batch axis parallel (megacore).
        out = pl.pallas_call(
            _actor_kernel_resident,
            out_shape=out_shape,
            grid_spec=pltpu.PrefetchScalarGridSpec(
                num_scalar_prefetch=0,
                grid=grid,
                in_specs=head_specs + [
                    const_spec((HIDDEN, HIDDEN)),    # w2
                    const_spec((1, HIDDEN)),         # b2
                    const_spec((HIDDEN, OUT_PAD)),   # w3
                    const_spec((1, OUT_PAD)),        # b3
                ],
                out_specs=out_spec,
            ),
            compiler_params=pltpu.CompilerParams(
                dimension_semantics=("parallel",)),
            cost_estimate=cost,
        )(*args)

    return out[:B, :ACTION_DIM]


def _reference_forward_f32(params, state, action_noise, t):
    """Pure-JAX f32 reference matching the PyTorch forward semantics exactly."""
    time_embed = params["embed"][t]
    x = jnp.concatenate([state, action_noise, time_embed], axis=1)
    h1 = jnp.maximum(x @ params["w1"] + params["b1"], 0.0)
    h2 = jnp.maximum(h1 @ params["w2"] + params["b2"], 0.0)
    return h2 @ params["w3"] + params["b3"]


def _reference_forward_matched(kparams, state, action_noise, t):
    """Pure-JAX reference using the same folded/padded mixed-precision params as the kernel."""
    B = state.shape[0]
    xsa = jnp.zeros((B, SA_PAD), jnp.bfloat16)
    xsa = xsa.at[:, :STATE_DIM].set(state.astype(jnp.bfloat16))
    xsa = xsa.at[:, STATE_DIM:SA_DIM].set(action_noise.astype(jnp.bfloat16))
    h1 = (kparams["emb_w1"][t]
          + jnp.dot(xsa, kparams["w1sa"], preferred_element_type=jnp.float32))
    h1 = jnp.maximum(h1, 0.0).astype(jnp.bfloat16)
    h2 = jnp.dot(h1, kparams["w2"], preferred_element_type=jnp.float32) + kparams["b2"]
    h2 = jnp.maximum(h2, 0.0).astype(jnp.bfloat16)
    out = jnp.dot(h2, kparams["w3"], preferred_element_type=jnp.float32) + kparams["b3"]
    return out[:, :ACTION_DIM]


def init_params(key):
    """Deterministic synthetic parameters with the shapes implied by __init__ (f32, PyTorch layout)."""
    ks = jax.random.split(key, 7)
    def lin(kw, fan_in, fan_out):
        bound = 1.0 / np.sqrt(fan_in)
        return jax.random.uniform(kw, (fan_in, fan_out), jnp.float32, -bound, bound)
    return {
        "embed": jax.random.normal(ks[0], (T_STEPS, HIDDEN), jnp.float32),
        "w1": lin(ks[1], D_IN, HIDDEN),
        "b1": jax.random.uniform(ks[2], (1, HIDDEN), jnp.float32, -0.04, 0.04),
        "w2": lin(ks[3], HIDDEN, HIDDEN),
        "b2": jax.random.uniform(ks[4], (1, HIDDEN), jnp.float32, -0.04, 0.04),
        "w3": lin(ks[5], HIDDEN, ACTION_DIM),
        "b3": jax.random.uniform(ks[6], (1, ACTION_DIM), jnp.float32, -0.04, 0.04),
    }


if __name__ == "__main__":
    key = jax.random.PRNGKey(0)
    kp, ks, ka, kt = jax.random.split(key, 4)

    params = init_params(kp)
    kparams = prepare_kernel_params(params)
    forward = jax.jit(diffusion_actor_forward)

    # 1) Small inference-shaped batch (grid == 1 -> manual w2/w3 DMA-overlap kernel).
    B = 2
    state = jax.random.normal(ks, (B, STATE_DIM), jnp.float32)
    action_noise = jax.random.normal(ka, (B, ACTION_DIM), jnp.float32)
    t = jax.random.randint(kt, (B,), 0, T_STEPS, dtype=jnp.int32)
    out = jax.block_until_ready(forward(kparams, state, action_noise, t))

    ref_matched = _reference_forward_matched(kparams, state, action_noise, t)
    np.testing.assert_allclose(np.asarray(out), np.asarray(ref_matched), rtol=1e-2, atol=1e-2)
    ref_f32 = _reference_forward_f32(params, state, action_noise, t)
    np.testing.assert_allclose(np.asarray(out), np.asarray(ref_f32), rtol=5e-2, atol=5e-2)

    # 2) Batched path (grid > 1 -> resident-weight kernel, exercises padding + parallel axis).
    B2 = 160
    s2 = jax.random.normal(ks, (B2, STATE_DIM), jnp.float32)
    a2 = jax.random.normal(ka, (B2, ACTION_DIM), jnp.float32)
    t2 = jax.random.randint(kt, (B2,), 0, T_STEPS, dtype=jnp.int32)
    out2 = jax.block_until_ready(forward(kparams, s2, a2, t2))
    ref2_f32 = _reference_forward_f32(params, s2, a2, t2)
    np.testing.assert_allclose(np.asarray(out2), np.asarray(ref2_f32), rtol=5e-2, atol=5e-2)

    # TODO(synk): get_action / get_actions_batch wrap this forward in the external
    # scheduler.step denoising loop (25 steps) plus tanh*scale+bias; keeping the
    # ~0.8 MB of weights resident across all 25 steps needs either the scheduler
    # coefficients passed in with a step grid axis, or the cross-pallas_call
    # semaphore/VMEM future pattern (P10) — not done here because scheduler.step
    # lives outside this module's forward.
    print("KERNEL_OK")
</pallas_src>

<mosaic_0001>
module attributes {stable_mosaic.version = 11 : i64} {
  func.func @_actor_kernel_overlap(%arg0: i32, %arg1: memref<8x128xbf16, #tpu.memory_space<vmem>>, %arg2: memref<8x1xi32, #tpu.memory_space<vmem>>, %arg3: memref<32x512xf32, #tpu.memory_space<vmem>>, %arg4: memref<128x512xbf16, #tpu.memory_space<vmem>>, %arg5: memref<512x512xbf16, #tpu.memory_space<any>>, %arg6: memref<1x512xf32, #tpu.memory_space<vmem>>, %arg7: memref<512x128xbf16, #tpu.memory_space<any>>, %arg8: memref<1x128xf32, #tpu.memory_space<vmem>>, %arg9: memref<8x128xf32, #tpu.memory_space<vmem>>, %arg10: memref<512x512xbf16, #tpu.memory_space<vmem>>, %arg11: memref<512x128xbf16, #tpu.memory_space<vmem>>, %arg12: memref<2x!tpu.dma_semaphore, #tpu.memory_space<semaphore_mem>>) attributes {dimension_semantics = [#tpu.dimension_semantics<arbitrary>], iteration_bounds = array<i64: 1>, scalar_prefetch = 0 : i64, scratch_operands = 3 : i64, tpu.core_type = #tpu.core_type<tc>, window_params = [{transform_indices = @transform_0, window_bounds = array<i64: 8, 128>}, {transform_indices = @transform_1, window_bounds = array<i64: 8, 1>}, {pipeline_mode = #tpu.pipeline_mode<synchronous>, transform_indices = @transform_2, window_bounds = array<i64: 32, 512>}, {pipeline_mode = #tpu.pipeline_mode<synchronous>, transform_indices = @transform_3, window_bounds = array<i64: 128, 512>}, {}, {pipeline_mode = #tpu.pipeline_mode<synchronous>, transform_indices = @transform_5, window_bounds = array<i64: 1, 512>}, {}, {pipeline_mode = #tpu.pipeline_mode<synchronous>, transform_indices = @transform_7, window_bounds = array<i64: 1, 128>}, {transform_indices = @transform_8, window_bounds = array<i64: 8, 128>}]} {
    %c0_i32 = arith.constant 0 : i32
    %0 = tpu.memref_slice %arg12[%c0_i32] : memref<2x!tpu.dma_semaphore, #tpu.memory_space<semaphore_mem>> -> memref<1x!tpu.dma_semaphore, #tpu.memory_space<semaphore_mem>>
    %1 = tpu.memref_squeeze %0 : memref<1x!tpu.dma_semaphore, #tpu.memory_space<semaphore_mem>> -> memref<!tpu.dma_semaphore, #tpu.memory_space<semaphore_mem>>
    tpu.enqueue_dma source(%arg5 : memref<512x512xbf16, #tpu.memory_space<any>>) target(%arg10 : memref<512x512xbf16, #tpu.memory_space<vmem>>) target_semaphore(%1 : memref<!tpu.dma_semaphore, #tpu.memory_space<semaphore_mem>>)
    %c1_i32 = arith.constant 1 : i32
    %2 = tpu.memref_slice %arg12[%c1_i32] : memref<2x!tpu.dma_semaphore, #tpu.memory_space<semaphore_mem>> -> memref<1x!tpu.dma_semaphore, #tpu.memory_space<semaphore_mem>>
    %3 = tpu.memref_squeeze %2 : memref<1x!tpu.dma_semaphore, #tpu.memory_space<semaphore_mem>> -> memref<!tpu.dma_semaphore, #tpu.memory_space<semaphore_mem>>
    tpu.enqueue_dma source(%arg7 : memref<512x128xbf16, #tpu.memory_space<any>>) target(%arg11 : memref<512x128xbf16, #tpu.memory_space<vmem>>) target_semaphore(%3 : memref<!tpu.dma_semaphore, #tpu.memory_space<semaphore_mem>>)
    %c0 = arith.constant 0 : index
    %c0_0 = arith.constant 0 : index
    %4 = vector.load %arg2[%c0, %c0_0] : memref<8x1xi32, #tpu.memory_space<vmem>>, vector<8x1xi32>
    %5 = tpu.iota {dimensions = array<i32: 1>} : vector<8x32xi32>
    %6 = vector.broadcast %4 : vector<8x1xi32> to vector<8x32xi32>
    %7 = arith.cmpi eq, %5, %6 : vector<8x32xi32>
    %8 = arith.extui %7 : vector<8x32xi1> to vector<8x32xi32>
    %9 = arith.sitofp %8 : vector<8x32xi32> to vector<8x32xf32>
    %c0_1 = arith.constant 0 : index
    %c0_2 = arith.constant 0 : index
    %10 = vector.load %arg3[%c0_1, %c0_2] : memref<32x512xf32, #tpu.memory_space<vmem>>, vector<32x512xf32>
    %cst = arith.constant dense<0.000000e+00> : vector<8x512xf32>
    %11 = tpu.matmul %9, %10, %cst {dimension_numbers = #tpu.dot_dimension_numbers<[1], [0], [0], [1], [0, 0, 1, 1], [], []>} : vector<8x32xf32>, vector<32x512xf32>, vector<8x512xf32> -> vector<8x512xf32>
    %c0_3 = arith.constant 0 : index
    %c0_4 = arith.constant 0 : index
    %12 = vector.load %arg1[%c0_3, %c0_4] : memref<8x128xbf16, #tpu.memory_space<vmem>>, vector<8x128xbf16>
    %c0_5 = arith.constant 0 : index
    %c0_6 = arith.constant 0 : index
    %13 = vector.load %arg4[%c0_5, %c0_6] : memref<128x512xbf16, #tpu.memory_space<vmem>>, vector<128x512xbf16>
    %cst_7 = arith.constant dense<0.000000e+00> : vector<8x512xf32>
    %14 = tpu.matmul %12, %13, %cst_7 {dimension_numbers = #tpu.dot_dimension_numbers<[1], [0], [0], [1], [0, 0, 1, 1], [], []>} : vector<8x128xbf16>, vector<128x512xbf16>, vector<8x512xf32> -> vector<8x512xf32>
    %15 = arith.addf %11, %14 : vector<8x512xf32>
    %cst_8 = arith.constant 0.000000e+00 : f32
    %16 = vector.broadcast %cst_8 : f32 to vector<8x512xf32>
    %17 = arith.maximumf %15, %16 : vector<8x512xf32>
    %18 = arith.truncf %17 : vector<8x512xf32> to vector<8x512xbf16>
    %c0_i32_9 = arith.constant 0 : i32
    %19 = tpu.memref_slice %arg12[%c0_i32_9] : memref<2x!tpu.dma_semaphore, #tpu.memory_space<semaphore_mem>> -> memref<1x!tpu.dma_semaphore, #tpu.memory_space<semaphore_mem>>
    %20 = tpu.memref_squeeze %19 : memref<1x!tpu.dma_semaphore, #tpu.memory_space<semaphore_mem>> -> memref<!tpu.dma_semaphore, #tpu.memory_space<semaphore_mem>>
    tpu.wait_dma2 semaphore(%20 : memref<!tpu.dma_semaphore, #tpu.memory_space<semaphore_mem>>) src(%arg5 : memref<512x512xbf16, #tpu.memory_space<any>>) dst(%arg10 : memref<512x512xbf16, #tpu.memory_space<vmem>>)
    %c0_10 = arith.constant 0 : index
    %c0_11 = arith.constant 0 : index
    %21 = vector.load %arg10[%c0_10, %c0_11] : memref<512x512xbf16, #tpu.memory_space<vmem>>, vector<512x512xbf16>
    %cst_12 = arith.constant dense<0.000000e+00> : vector<8x512xf32>
    %22 = tpu.matmul %18, %21, %cst_12 {dimension_numbers = #tpu.dot_dimension_numbers<[1], [0], [0], [1], [0, 0, 1, 1], [], []>} : vector<8x512xbf16>, vector<512x512xbf16>, vector<8x512xf32> -> vector<8x512xf32>
    %c0_13 = arith.constant 0 : index
    %c0_14 = arith.constant 0 : index
    %23 = vector.load %arg6[%c0_13, %c0_14] : memref<1x512xf32, #tpu.memory_space<vmem>>, vector<1x512xf32>
    %24 = vector.broadcast %23 : vector<1x512xf32> to vector<8x512xf32>
    %25 = arith.addf %22, %24 : vector<8x512xf32>
    %cst_15 = arith.constant 0.000000e+00 : f32
    %26 = vector.broadcast %cst_15 : f32 to vector<8x512xf32>
    %27 = arith.maximumf %25, %26 : vector<8x512xf32>
    %28 = arith.truncf %27 : vector<8x512xf32> to vector<8x512xbf16>
    %c1_i32_16 = arith.constant 1 : i32
    %29 = tpu.memref_slice %arg12[%c1_i32_16] : memref<2x!tpu.dma_semaphore, #tpu.memory_space<semaphore_mem>> -> memref<1x!tpu.dma_semaphore, #tpu.memory_space<semaphore_mem>>
    %30 = tpu.memref_squeeze %29 : memref<1x!tpu.dma_semaphore, #tpu.memory_space<semaphore_mem>> -> memref<!tpu.dma_semaphore, #tpu.memory_space<semaphore_mem>>
    tpu.wait_dma2 semaphore(%30 : memref<!tpu.dma_semaphore, #tpu.memory_space<semaphore_mem>>) src(%arg7 : memref<512x128xbf16, #tpu.memory_space<any>>) dst(%arg11 : memref<512x128xbf16, #tpu.memory_space<vmem>>)
    %c0_17 = arith.constant 0 : index
    %c0_18 = arith.constant 0 : index
    %31 = vector.load %arg11[%c0_17, %c0_18] : memref<512x128xbf16, #tpu.memory_space<vmem>>, vector<512x128xbf16>
    %cst_19 = arith.constant dense<0.000000e+00> : vector<8x128xf32>
    %32 = tpu.matmul %28, %31, %cst_19 {dimension_numbers = #tpu.dot_dimension_numbers<[1], [0], [0], [1], [0, 0, 1, 1], [], []>} : vector<8x512xbf16>, vector<512x128xbf16>, vector<8x128xf32> -> vector<8x128xf32>
    %c0_20 = arith.constant 0 : index
    %c0_21 = arith.constant 0 : index
    %33 = vector.load %arg8[%c0_20, %c0_21] : memref<1x128xf32, #tpu.memory_space<vmem>>, vector<1x128xf32>
    %34 = vector.broadcast %33 : vector<1x128xf32> to vector<8x128xf32>
    %35 = arith.addf %32, %34 : vector<8x128xf32>
    %c0_22 = arith.constant 0 : index
    %c0_23 = arith.constant 0 : index
    %36 = vector.load %arg9[%c0_22, %c0_23] : memref<8x128xf32, #tpu.memory_space<vmem>>, vector<8x128xf32>
    tpu.vector_store %arg9[%c0_22, %c0_23], %35 {strides = array<i32>} : memref<8x128xf32, #tpu.memory_space<vmem>>, vector<8x128xf32>,
    return
  }
  func.func @transform_0(%arg0: i32) -> (i32, i32) {
    %c0_i32 = arith.constant 0 : i32
    %c0_i32_0 = arith.constant 0 : i32
    return %arg0, %c0_i32 : i32, i32
  }
  func.func @transform_1(%arg0: i32) -> (i32, i32) {
    %c0_i32 = arith.constant 0 : i32
    %c0_i32_0 = arith.constant 0 : i32
    return %arg0, %c0_i32 : i32, i32
  }
  func.func @transform_2(%arg0: i32) -> (i32, i32) {
    %c0_i32 = arith.constant 0 : i32
    %c0_i32_0 = arith.constant 0 : i32
    %c0_i32_1 = arith.constant 0 : i32
    return %c0_i32, %c0_i32_0 : i32, i32
  }
  func.func @transform_3(%arg0: i32) -> (i32, i32) {
    %c0_i32 = arith.constant 0 : i32
    %c0_i32_0 = arith.constant 0 : i32
    %c0_i32_1 = arith.constant 0 : i32
    return %c0_i32, %c0_i32_0 : i32, i32
  }
  func.func @transform_5(%arg0: i32) -> (i32, i32) {
    %c0_i32 = arith.constant 0 : i32
    %c0_i32_0 = arith.constant 0 : i32
    %c0_i32_1 = arith.constant 0 : i32
    return %c0_i32, %c0_i32_0 : i32, i32
  }
  func.func @transform_7(%arg0: i32) -> (i32, i32) {
    %c0_i32 = arith.constant 0 : i32
    %c0_i32_0 = arith.constant 0 : i32
    %c0_i32_1 = arith.constant 0 : i32
    return %c0_i32, %c0_i32_0 : i32, i32
  }
  func.func @transform_8(%arg0: i32) -> (i32, i32) {
    %c0_i32 = arith.constant 0 : i32
    %c0_i32_0 = arith.constant 0 : i32
    return %arg0, %c0_i32 : i32, i32
  }
}

</mosaic_0001>

<bundles_post_ra>
// kernel: diffusion_actor_forward.1
= control target key start
LH: loop header
LB: loop body
LE: loop exit
PB: predicated region body
PF: predicated region fallthrough
CT: control target
= control target key end

     0   :  { %13 = vsyncpa [#allocation6], 0  ;;  %s2582_s0 = inlined_call_operand.vmem [shape: bf16[8,128], index: 0, kind: input, shape index: {}]   ;;  %s2583_s1 = inlined_call_operand.vmem [shape: s32[8,1], index: 1, kind: input, shape index: {}]   ;;  %s2584_s2 = inlined_call_operand.hbm [shape: f32[32,512], index: 2, kind: input, shape index: {}]   ;;  %s2585_s3 = inlined_call_operand.hbm [shape: bf16[128,512], index: 3, kind: input, shape index: {}]   ;;  %s2586_s4 = inlined_call_operand.hbm [shape: bf16[512,512], index: 4, kind: input, shape index: {}]   ;;  %s2587_s5 = inlined_call_operand.vmem [shape: f32[1,512], index: 5, kind: input, shape index: {}]   ;;  %s2588_s6 = inlined_call_operand.hbm [shape: bf16[512,128], index: 6, kind: input, shape index: {}]   ;;  %s2589_s7 = inlined_call_operand.vmem [shape: f32[1,128], index: 7, kind: input, shape index: {}]   ;;  %s2590_s8 = inlined_call_operand.vmem [shape: f32[8,128], index: 8, kind: output, shape index: {}]  }
   0x1   :  { %14 = vsyncpa [#allocation8], 0  ;;  %s2476_s27 = smov [#allocation5]  }
   0x2   :  { %s24_s28 = sshll.u32 %s2476_s27, 4  ;;  %s25_s28 = int_to_ptr.vmem [resolvable:$true] %s24_s28 }
   0x3   :  { %s2396_s29 = scalar_lea.vmem %s25_s28, 2048  ;;  %p2401_p1 = scmp.lt.s32.totalorder %s25_s28, %s25_s28 }
   0x4   :  { %p2397_p0 = scmp.ne.s32.totalorder %s25_s28, %s2396_s29  ;;  %p2402_p2 = scmp.lt.s32.totalorder %s2396_s29, %s2396_s29 }
   0x6   :  { %p2403_p3 = por %p2402_p2, %p2401_p1 }
   0x8   :  { %p2404_p4 = pnand %p2403_p3, %p2397_p0 }
   0xa   :  { %2407 = shalt.err (!%p2404_p4)
}
   0xb   :  { %s2477_s30 = smov 512   ;;  %s2478_s9 = smov 32  }
   0xc   :  { %30 = dma.hbm_to_vmem [thread:$0]  %s2584_s2, 2048, %s25_s28, [#allocation6], %s2477_s30, %s2477_s30, %s2478_s9  }
   0xd   :  { %s2479_s12 = smov [#allocation7]  }
   0xe   :  { %s36_s13 = sshll.u32 %s2479_s12, 4  ;;  %s37_s13 = int_to_ptr.vmem [resolvable:$true] %s36_s13 }
   0xf   :  { %s2416_s14 = scalar_lea.vmem %s37_s13, 4096  ;;  %p2421_p6 = scmp.lt.s32.totalorder %s37_s13, %s37_s13 }
  0x10   :  { %p2417_p5 = scmp.ne.s32.totalorder %s37_s13, %s2416_s14  ;;  %p2422_p7 = scmp.lt.s32.totalorder %s2416_s14, %s2416_s14 }
  0x12   :  { %p2423_p8 = por %p2422_p7, %p2421_p6 }
  0x14   :  { %p2424_p9 = pnand %p2423_p8, %p2417_p5 }
  0x16   :  { %2427 = shalt.err (!%p2424_p9)
}
  0x17   :  { %s2480_s15 = smov 256   ;;  %s2481_s16 = smov 16  }
  0x18   :  { %42 = dma.hbm_to_vmem [thread:$0]  %s2585_s3, 4096, %s37_s13, [#allocation8], %s2480_s15, %s2480_s15, %s2481_s16  }
  0x19   :  { %2468 = dma.done.wait [#allocation6], 2048  }
  0x1a   :  { %2469 = vsyncadd [#allocation6], 4294965248 }
  0x1b   :  { %2470 = dma.done.wait [#allocation8], 4096  }
  0x1c   :  { %2471 = vsyncadd [#allocation8], 4294963200  ;;  %v2482_v0 = vmov 0   ;;  %v77_v1 = vld [vmem:[%s2583_s1] sm:$0xff]  ;;  %v2118_v3 = vld [vmem:[#allocation7 + $0xec] ss:$16 sps:$4 sm:$0xff]   ;;  %v78_v52 = vlaneseq }
  0x1d   :  { %2115 = vset.pattern.permute.xlu0 %v2482_v0  ;;  %327 = vmatprep.mubr.bf16.mxu0 %v2482_v0  ;;  %v2116_v2 = vld [vmem:[#allocation7 + $0xe4] ss:$16 sps:$4 sm:$0xff]   ;;  %v2120_v4 = vld [vmem:[#allocation7 + $0xe0] ss:$16 sps:$4 sm:$0xff]   ;;  %v2121_v5 = vld [vmem:[#allocation7 + $0xe8] ss:$16 sps:$4 sm:$0xff]  }
  0x1e   :  { %368 = vmatprep.mubr.bf16.mxu1 %v2482_v0  ;;  %81 = vperm.xlu0 %2115, %v77_v1   ;;  %v2122_v6 = vld [vmem:[#allocation7 + $0xc4] ss:$16 sps:$4 sm:$0xff]   ;;  %v2124_v7 = vld [vmem:[#allocation7 + $0xcc] ss:$16 sps:$4 sm:$0xff]   ;;  %v2126_v8 = vld [vmem:[#allocation7 + $0xc0] ss:$16 sps:$4 sm:$0xff]  }
  0x1f   :  { %295 = vmatprep.subr.bf16.mxu0 %v2116_v2  ;;  %336 = vmatprep.subr.bf16.mxu1 %v2118_v3  ;;  %v2127_v9 = vld [vmem:[#allocation7 + $0xc8] ss:$16 sps:$4 sm:$0xff]   ;;  %v2128_v10 = vld [vmem:[#allocation7 + $0xa4] ss:$16 sps:$4 sm:$0xff]   ;;  %v2130_v11 = vld [vmem:[#allocation7 + $0xac] ss:$16 sps:$4 sm:$0xff]  }
  0x20   :  { %296 = vmatpush1.bf16.msra.mxu0 %v2120_v4  ;;  %337 = vmatpush1.bf16.msra.mxu1 %v2121_v5  ;;  %v2132_v12 = vld [vmem:[#allocation7 + $0xa0] ss:$16 sps:$4 sm:$0xff]   ;;  %v2133_v13 = vld [vmem:[#allocation7 + $0xa8] ss:$16 sps:$4 sm:$0xff]   ;;  %v2134_v14 = vld [vmem:[#allocation7 + $0x84] ss:$16 sps:$4 sm:$0xff]  }
  0x21   :  { %297 = vmatprep.subr.bf16.mxu0 %v2122_v6  ;;  %338 = vmatprep.subr.bf16.mxu1 %v2124_v7  ;;  %v2136_v15 = vld [vmem:[#allocation7 + $0x8c] ss:$16 sps:$4 sm:$0xff]   ;;  %v2138_v16 = vld [vmem:[#allocation7 + $0x80] ss:$16 sps:$4 sm:$0xff]   ;;  %v2139_v17 = vld [vmem:[#allocation7 + $0x88] ss:$16 sps:$4 sm:$0xff]  }
  0x22   :  { %v2140_v18 = vld [vmem:[#allocation7 + $0x64] ss:$16 sps:$4 sm:$0xff]   ;;  %v2142_v19 = vld [vmem:[#allocation7 + $0x6c] ss:$16 sps:$4 sm:$0xff]   ;;  %v2144_v20 = vld [vmem:[#allocation7 + $0x60] ss:$16 sps:$4 sm:$0xff]  }
  0x23   :  { %v2145_v21 = vld [vmem:[#allocation7 + $0x68] ss:$16 sps:$4 sm:$0xff]   ;;  %v2146_v22 = vld [vmem:[#allocation7 + $0x44] ss:$16 sps:$4 sm:$0xff]   ;;  %v2148_v23 = vld [vmem:[#allocation7 + $0x4c] ss:$16 sps:$4 sm:$0xff]  }
  0x24   :  { %298 = vmatpush1.bf16.msra.mxu0 %v2126_v8  ;;  %339 = vmatpush1.bf16.msra.mxu1 %v2127_v9  ;;  %v2150_v24 = vld [vmem:[#allocation7 + $0x40] ss:$16 sps:$4 sm:$0xff]   ;;  %v2151_v25 = vld [vmem:[#allocation7 + $0x48] ss:$16 sps:$4 sm:$0xff]   ;;  %v2152_v26 = vld [vmem:[#allocation7 + $0x24] ss:$16 sps:$4 sm:$0xff]  }
  0x25   :  { %299 = vmatprep.subr.bf16.mxu0 %v2128_v10  ;;  %340 = vmatprep.subr.bf16.mxu1 %v2130_v11  ;;  %v2154_v27 = vld [vmem:[#allocation7 + $0x2c] ss:$16 sps:$4 sm:$0xff]   ;;  %v2156_v28 = vld [vmem:[#allocation7 + $0x20] ss:$16 sps:$4 sm:$0xff]   ;;  %v2157_v29 = vld [vmem:[#allocation7 + $0x28] ss:$16 sps:$4 sm:$0xff]  }
  0x26   :  { %v2158_v30 = vld [vmem:[#allocation7 + $0x4] ss:$16 sps:$4 sm:$0xff]   ;;  %v2160_v31 = vld [vmem:[#allocation7 + $0xc] ss:$16 sps:$4 sm:$0xff]   ;;  %v2162_v32 = vld [vmem:[#allocation7] ss:$16 sps:$4 sm:$0xff]  }
  0x27   :  { %v2163_v33 = vld [vmem:[#allocation7 + $0x8] ss:$16 sps:$4 sm:$0xff]   ;;  %v102_v36 = vld [vmem:[%s2582_s0] sm:$0xf]  ;;  %v100_v38 = vld [vmem:[#allocation5 + $0x70] sm:$0xff]  ;;  %v2483_v51 = vmov 0.0  }
  0x28   :  { %300 = vmatpush1.bf16.msra.mxu0 %v2132_v12  ;;  %341 = vmatpush1.bf16.msra.mxu1 %v2133_v13  ;;  %v99_v34 = vld [vmem:[#allocation5 + $0x68] sm:$0xff]  ;;  %v101_v35 = vld [vmem:[#allocation5 + $0x78] sm:$0xff]  ;;  %v98_v37 = vld [vmem:[#allocation5 + $0x60] sm:$0xff]  ;;  %v79_v53 = vand.u32 127, %v78_v52  ;;  %vm377_vm0 = vcmask 261120   ;;  %s2484_s0 = smov [#allocation2]  }
  0x29   :  { %301 = vmatprep.subr.bf16.mxu0 %v2134_v14  ;;  %342 = vmatprep.subr.bf16.mxu1 %v2136_v15  ;;  %v95_v39 = vld [vmem:[#allocation5 + $0x48] sm:$0xff]  ;;  %v97_v40 = vld [vmem:[#allocation5 + $0x58] sm:$0xff]  ;;  %v94_v41 = vld [vmem:[#allocation5 + $0x40] sm:$0xff]  ;;  %s61_s20 = sshll.u32 %s2484_s0, 4  ;;  %s2485_s21 = smov [#allocation3]   ;;  %s62_s20 = int_to_ptr.vmem [resolvable:$true] %s61_s20 }
  0x2a   :  { %v96_v42 = vld [vmem:[#allocation5 + $0x50] sm:$0xff]  ;;  %v91_v43 = vld [vmem:[#allocation5 + $0x28] sm:$0xff]  ;;  %v93_v44 = vld [vmem:[#allocation5 + $0x38] sm:$0xff]  ;;  %s73_s22 = sshll.u32 %s2485_s21, 4  ;;  %s2436_s23 = scalar_lea.vmem %s62_s20, 16384  ;;  %s74_s22 = int_to_ptr.vmem [resolvable:$true] %s73_s22 }
  0x2b   :  { %v90_v45 = vld [vmem:[#allocation5 + $0x20] sm:$0xff]  ;;  %v92_v46 = vld [vmem:[#allocation5 + $0x30] sm:$0xff]  ;;  %v87_v47 = vld [vmem:[#allocation5 + $0x8] sm:$0xff]  ;;  %p2437_p10 = scmp.ne.s32.totalorder %s62_s20, %s2436_s23  ;;  %p2441_p11 = scmp.lt.s32.totalorder %s62_s20, %s62_s20 }
  0x2c   :  { %302 = vmatpush1.bf16.msra.mxu0 %v2138_v16  ;;  %343 = vmatpush1.bf16.msra.mxu1 %v2139_v17  ;;  %v89_v48 = vld [vmem:[#allocation5 + $0x18] sm:$0xff]  ;;  %v86_v49 = vld [vmem:[#allocation5] sm:$0xff]  ;;  %v88_v50 = vld [vmem:[#allocation5 + $0x10] sm:$0xff]  ;;  %p2442_p12 = scmp.lt.s32.totalorder %s2436_s23, %s2436_s23 }
  0x2d   :  { %303 = vmatprep.subr.bf16.mxu0 %v2140_v18  ;;  %344 = vmatprep.subr.bf16.mxu1 %v2142_v19 }
  0x2e   :  { %p2443_p13 = por %p2442_p12, %p2441_p11 }
  0x30   :  { %304 = vmatpush1.bf16.msra.mxu0 %v2144_v20  ;;  %345 = vmatpush1.bf16.msra.mxu1 %v2145_v21  ;;  %p2444_p0 = pnand %p2443_p13, %p2437_p10 }
  0x31   :  { %305 = vmatprep.subr.bf16.mxu0 %v2146_v22  ;;  %346 = vmatprep.subr.bf16.mxu1 %v2148_v23 }
  0x34   :  { %306 = vmatpush1.bf16.msra.mxu0 %v2150_v24  ;;  %347 = vmatpush1.bf16.msra.mxu1 %v2151_v25 }
  0x35   :  { %307 = vmatprep.subr.bf16.mxu0 %v2152_v26  ;;  %348 = vmatprep.subr.bf16.mxu1 %v2154_v27 }
  0x38   :  { %308 = vmatpush1.bf16.msra.mxu0 %v2156_v28  ;;  %349 = vmatpush1.bf16.msra.mxu1 %v2157_v29 }
  0x39   :  { %309 = vmatprep.subr.bf16.mxu0 %v2158_v30  ;;  %350 = vmatprep.subr.bf16.mxu1 %v2160_v31 }
  0x3c   :  { %310 = vmatpush1.bf16.msra.mxu0 %v2162_v32  ;;  %351 = vmatpush1.bf16.msra.mxu1 %v2163_v33 }
  0x3d   :  { %405 = vmatprep.subr.mxu0 %v99_v34  ;;  %476 = vmatprep.subr.mxu1 %v101_v35 }
  0x3f   :  { %328 = vmatmul.mubr.bf16.vlgmr.msra.gmra.mxu0 %v102_v36  ;;  %369 = vmatmul.mubr.bf16.vlgmr.msra.gmra.mxu1 %v102_v36 }
  0x40   :  { %406 = vmatpush1.msra.mxu0 %v98_v37  ;;  %477 = vmatpush1.msra.mxu1 %v100_v38 }
  0x41   :  { %407 = vmatprep.subr.mxu0 %v95_v39  ;;  %478 = vmatprep.subr.mxu1 %v97_v40 }
  0x42   :  { %408 = vmatpush1.msra.mxu0 %v94_v41  ;;  %479 = vmatpush1.msra.mxu1 %v96_v42 }
  0x43   :  { %409 = vmatprep.subr.mxu0 %v91_v43  ;;  %480 = vmatprep.subr.mxu1 %v93_v44 }
  0x44   :  { %410 = vmatpush1.msra.mxu0 %v90_v45  ;;  %481 = vmatpush1.msra.mxu1 %v92_v46 }
  0x45   :  { %411 = vmatprep.subr.mxu0 %v87_v47  ;;  %482 = vmatprep.subr.mxu1 %v89_v48 }
  0x46   :  { %412 = vmatpush1.msra.mxu0 %v86_v49  ;;  %483 = vmatpush1.msra.mxu1 %v88_v50 }
  0x47   :  { %445 = vmatprep.mubr.f32.mxu0 %v2483_v51  ;;  %516 = vmatprep.mubr.f32.mxu1 %v2483_v51 }
  0x99   :  { %v82_v54 = vpop.permute.xlu0 %81 }
  0x9a   :  { %vm83_vm1 = vcmp.eq.s32.totalorder %v79_v53, %v82_v54 }
  0x9b   :  { %v1863_v55 = vsel %vm83_vm1, 1.0, %v2483_v51 }
  0x9c   :  { %1896 = vmatmul.mubr.msk.f32.vlgmr.msra.gmra.mxu0 %vm377_vm0, %v1863_v55  ;;  %1897 = vmatmul.mubr.msk.f32.vlgmr.msra.gmra.mxu1 %vm377_vm0, %v1863_v55 }
  0x9d   :  { %2447 = shalt.err (!%p2444_p0)  }
  0x9e   :  { %64 = dma.hbm_to_vmem [thread:$0]  %s2586_s4, 16384, %s62_s20, [#allocation4] }
  0x9f   :  { %s2456_s26 = scalar_lea.vmem %s74_s22, 4096  ;;  %p2461_p2 = scmp.lt.s32.totalorder %s74_s22, %s74_s22 }
  0xa0   :  { %p2457_p1 = scmp.ne.s32.totalorder %s74_s22, %s2456_s26  ;;  %p2462_p3 = scmp.lt.s32.totalorder %s2456_s26, %s2456_s26 }
  0xa2   :  { %p2463_p4 = por %p2462_p3, %p2461_p2 }
  0xa4   :  { %p2464_p5 = pnand %p2463_p4, %p2457_p1 }
  0xa6   :  { %2467 = shalt.err (!%p2464_p5)  }
  0xa7   :  { %76 = dma.hbm_to_vmem [thread:$0]  %s2588_s6, 4096, %s74_s22, [#allocation4 + $0x1] }
  0xff   :  { %v329_v56 = vpop.f32.mrf.mxu0  ;;  %v370_v57 = vpop.f32.mrf.mxu1 }
 0x101   :  { %v331_v58 = vpop.f32.mrf.mxu0  ;;  %v372_v59 = vpop.f32.mrf.mxu1 }
 0x103   :  { %v333_v60 = vpop.f32.mrf.mxu0  ;;  %v374_v61 = vpop.f32.mrf.mxu1 }
 0x105   :  { %v334_v62 = vpop.f32.mrf.mxu0  ;;  %v375_v63 = vpop.f32.mrf.mxu1 }
 0x15c   :  { %v447_v0 = vpop.f32.mrf.mxu0  ;;  %v518_v1 = vpop.f32.mrf.mxu1 }
 0x15d   :  { %v448_v2 = vadd.f32 %v447_v0, %v329_v56  ;;  %v519_v3 = vadd.f32 %v518_v1, %v370_v57 }
 0x15e   :  { %v449_v4 = vpop.f32.mrf.mxu0  ;;  %v520_v5 = vpop.f32.mrf.mxu1 }
 0x15f   :  { %v523_v6 = vmax.f32 %v448_v2, 0.0  ;;  %v525_v7 = vmax.f32 %v519_v3, 0.0  ;;  %v450_v8 = vadd.f32 %v449_v4, %v331_v58  ;;  %v521_v9 = vadd.f32 %v520_v5, %v372_v59 }
 0x161   :  { %v2550_v10 = vpack.c.bf16 %v523_v6, %v523_v6  ;;  %v2552_v11 = vpack.c.bf16 %v525_v7, %v525_v7  ;;  %v524_v12 = vmax.f32 %v450_v8, 0.0  ;;  %v526_v13 = vmax.f32 %v521_v9, 0.0 }
 0x163   :  { %v2554_v14 = vpack.c.bf16 %v524_v12, %v524_v12  ;;  %v2556_v15 = vpack.c.bf16 %v526_v13, %v526_v13 }
 0x164   :  { %2472 = dma.done.wait [#allocation4], 16384 }
 0x165   :  { %2473 = vsyncadd [#allocation4], 4294950912  ;;  %1357 = vmatprep.mubr.bf16.mxu0 %v2554_v14  ;;  %1398 = vmatprep.mubr.bf16.mxu1 %v2556_v15  ;;  %v2164_v16 = vld [vmem:[#allocation2 + $0xe4] ss:$16 sps:$4 sm:$0xff]   ;;  %v2168_v18 = vld [vmem:[#allocation2 + $0xe0] ss:$16 sps:$4 sm:$0xff]  }
 0x166   :  { %v2166_v17 = vld [vmem:[#allocation2 + $0x2e4] ss:$16 sps:$4 sm:$0xff]   ;;  %1325 = vmatprep.subr.bf16.mxu0 %v2164_v16  ;;  %v2169_v19 = vld [vmem:[#allocation2 + $0x2e0] ss:$16 sps:$4 sm:$0xff]  }
 0x167   :  { %1366 = vmatprep.subr.bf16.mxu1 %v2166_v17  ;;  %v2170_v20 = vld [vmem:[#allocation2 + $0xc4] ss:$16 sps:$4 sm:$0xff]   ;;  %1326 = vmatpush1.bf16.msra.mxu0 %v2168_v18  ;;  %v2174_v22 = vld [vmem:[#allocation2 + $0xc0] ss:$16 sps:$4 sm:$0xff]  }
 0x168   :  { %1367 = vmatpush1.bf16.msra.mxu1 %v2169_v19  ;;  %v2172_v21 = vld [vmem:[#allocation2 + $0x2c4] ss:$16 sps:$4 sm:$0xff]   ;;  %1327 = vmatprep.subr.bf16.mxu0 %v2170_v20  ;;  %v2175_v23 = vld [vmem:[#allocation2 + $0x2c0] ss:$16 sps:$4 sm:$0xff]  }
 0x169   :  { %1368 = vmatprep.subr.bf16.mxu1 %v2172_v21  ;;  %v2176_v24 = vld [vmem:[#allocation2 + $0xa4] ss:$16 sps:$4 sm:$0xff]   ;;  %v2180_v26 = vld [vmem:[#allocation2 + $0xa0] ss:$16 sps:$4 sm:$0xff]   ;;  %v2262_v21 = vld [vmem:[#allocation2 + $0xec] ss:$16 sps:$4 sm:$0xff]  }
 0x16a   :  { %v2178_v25 = vld [vmem:[#allocation2 + $0x2a4] ss:$16 sps:$4 sm:$0xff]   ;;  %v2181_v27 = vld [vmem:[#allocation2 + $0x2a0] ss:$16 sps:$4 sm:$0xff]  }
 0x16b   :  { %1328 = vmatpush1.bf16.msra.mxu0 %v2174_v22  ;;  %v2182_v28 = vld [vmem:[#allocation2 + $0x84] ss:$16 sps:$4 sm:$0xff]   ;;  %v2186_v30 = vld [vmem:[#allocation2 + $0x80] ss:$16 sps:$4 sm:$0xff]   ;;  %v2265_v22 = vld [vmem:[#allocation2 + $0x2ec] ss:$16 sps:$4 sm:$0xff]  }
 0x16c   :  { %1369 = vmatpush1.bf16.msra.mxu1 %v2175_v23  ;;  %1329 = vmatprep.subr.bf16.mxu0 %v2176_v24  ;;  %v2184_v29 = vld [vmem:[#allocation2 + $0x284] ss:$16 sps:$4 sm:$0xff]   ;;  %v2187_v31 = vld [vmem:[#allocation2 + $0x280] ss:$16 sps:$4 sm:$0xff]   ;;  %v2260_v23 = vld [vmem:[#allocation2 + $0xe8] ss:$16 sps:$4 sm:$0xff]  }
 0x16d   :  { %1370 = vmatprep.subr.bf16.mxu1 %v2178_v25  ;;  %v2188_v32 = vld [vmem:[#allocation2 + $0x64] ss:$16 sps:$4 sm:$0xff]   ;;  %v2192_v34 = vld [vmem:[#allocation2 + $0x60] ss:$16 sps:$4 sm:$0xff]   ;;  %v2263_v24 = vld [vmem:[#allocation2 + $0x2e8] ss:$16 sps:$4 sm:$0xff]  }
 0x16e   :  { %v2190_v33 = vld [vmem:[#allocation2 + $0x264] ss:$16 sps:$4 sm:$0xff]   ;;  %v2193_v35 = vld [vmem:[#allocation2 + $0x260] ss:$16 sps:$4 sm:$0xff]   ;;  %v2268_v25 = vld [vmem:[#allocation2 + $0xcc] ss:$16 sps:$4 sm:$0xff]  }
 0x16f   :  { %1330 = vmatpush1.bf16.msra.mxu0 %v2180_v26  ;;  %v2194_v36 = vld [vmem:[#allocation2 + $0x44] ss:$16 sps:$4 sm:$0xff]   ;;  %v2198_v38 = vld [vmem:[#allocation2 + $0x40] ss:$16 sps:$4 sm:$0xff]   ;;  %v2271_v26 = vld [vmem:[#allocation2 + $0x2cc] ss:$16 sps:$4 sm:$0xff]  }
 0x170   :  { %1371 = vmatpush1.bf16.msra.mxu1 %v2181_v27  ;;  %1331 = vmatprep.subr.bf16.mxu0 %v2182_v28  ;;  %v2196_v37 = vld [vmem:[#allocation2 + $0x244] ss:$16 sps:$4 sm:$0xff]   ;;  %v2199_v39 = vld [vmem:[#allocation2 + $0x240] ss:$16 sps:$4 sm:$0xff]   ;;  %v2266_v27 = vld [vmem:[#allocation2 + $0xc8] ss:$16 sps:$4 sm:$0xff]  }
 0x171   :  { %1372 = vmatprep.subr.bf16.mxu1 %v2184_v29  ;;  %v2200_v40 = vld [vmem:[#allocation2 + $0x24] ss:$16 sps:$4 sm:$0xff]   ;;  %v2204_v42 = vld [vmem:[#allocation2 + $0x20] ss:$16 sps:$4 sm:$0xff]   ;;  %v2269_v28 = vld [vmem:[#allocation2 + $0x2c8] ss:$16 sps:$4 sm:$0xff]  }
 0x172   :  { %v2202_v41 = vld [vmem:[#allocation2 + $0x224] ss:$16 sps:$4 sm:$0xff]   ;;  %v2205_v43 = vld [vmem:[#allocation2 + $0x220] ss:$16 sps:$4 sm:$0xff]   ;;  %v2274_v29 = vld [vmem:[#allocation2 + $0xac] ss:$16 sps:$4 sm:$0xff]  }
 0x173   :  { %1332 = vmatpush1.bf16.msra.mxu0 %v2186_v30  ;;  %v2206_v44 = vld [vmem:[#allocation2 + $0x4] ss:$16 sps:$4 sm:$0xff]   ;;  %v2210_v46 = vld [vmem:[#allocation2] ss:$16 sps:$4 sm:$0xff]   ;;  %v2277_v30 = vld [vmem:[#allocation2 + $0x2ac] ss:$16 sps:$4 sm:$0xff]  }
 0x174   :  { %1373 = vmatpush1.bf16.msra.mxu1 %v2187_v31  ;;  %1333 = vmatprep.subr.bf16.mxu0 %v2188_v32  ;;  %v2208_v45 = vld [vmem:[#allocation2 + $0x204] ss:$16 sps:$4 sm:$0xff]   ;;  %v2211_v47 = vld [vmem:[#allocation2 + $0x200] ss:$16 sps:$4 sm:$0xff]   ;;  %v2272_v31 = vld [vmem:[#allocation2 + $0xa8] ss:$16 sps:$4 sm:$0xff]  }
 0x175   :  { %1374 = vmatprep.subr.bf16.mxu1 %v2190_v33  ;;  %v2212_v48 = vld [vmem:[#allocation2 + $0x1e4] ss:$16 sps:$4 sm:$0xff]   ;;  %v2216_v50 = vld [vmem:[#allocation2 + $0x1e0] ss:$16 sps:$4 sm:$0xff]   ;;  %v2275_v32 = vld [vmem:[#allocation2 + $0x2a8] ss:$16 sps:$4 sm:$0xff]  }
 0x176   :  { %v2214_v49 = vld [vmem:[#allocation2 + $0x3e4] ss:$16 sps:$4 sm:$0xff]   ;;  %v2217_v51 = vld [vmem:[#allocation2 + $0x3e0] ss:$16 sps:$4 sm:$0xff]   ;;  %v2280_v33 = vld [vmem:[#allocation2 + $0x8c] ss:$16 sps:$4 sm:$0xff]  }
 0x177   :  { %1334 = vmatpush1.bf16.msra.mxu0 %v2192_v34  ;;  %v2218_v53 = vld [vmem:[#allocation2 + $0x1c4] ss:$16 sps:$4 sm:$0xff]   ;;  %v2222_v55 = vld [vmem:[#allocation2 + $0x1c0] ss:$16 sps:$4 sm:$0xff]   ;;  %v2283_v34 = vld [vmem:[#allocation2 + $0x28c] ss:$16 sps:$4 sm:$0xff]  }
 0x178   :  { %1375 = vmatpush1.bf16.msra.mxu1 %v2193_v35  ;;  %1335 = vmatprep.subr.bf16.mxu0 %v2194_v36  ;;  %v2220_v54 = vld [vmem:[#allocation2 + $0x3c4] ss:$16 sps:$4 sm:$0xff]   ;;  %v2223_v56 = vld [vmem:[#allocation2 + $0x3c0] ss:$16 sps:$4 sm:$0xff]   ;;  %v2278_v35 = vld [vmem:[#allocation2 + $0x88] ss:$16 sps:$4 sm:$0xff]  }
 0x179   :  { %1376 = vmatprep.subr.bf16.mxu1 %v2196_v37  ;;  %v2224_v57 = vld [vmem:[#allocation2 + $0x1a4] ss:$16 sps:$4 sm:$0xff]   ;;  %v2228_v59 = vld [vmem:[#allocation2 + $0x1a0] ss:$16 sps:$4 sm:$0xff]   ;;  %v2281_v36 = vld [vmem:[#allocation2 + $0x288] ss:$16 sps:$4 sm:$0xff]  }
 0x17a   :  { %v2226_v58 = vld [vmem:[#allocation2 + $0x3a4] ss:$16 sps:$4 sm:$0xff]   ;;  %v2229_v60 = vld [vmem:[#allocation2 + $0x3a0] ss:$16 sps:$4 sm:$0xff]   ;;  %v2286_v37 = vld [vmem:[#allocation2 + $0x6c] ss:$16 sps:$4 sm:$0xff]  }
 0x17b   :  { %1336 = vmatpush1.bf16.msra.mxu0 %v2198_v38  ;;  %v2230_v61 = vld [vmem:[#allocation2 + $0x184] ss:$16 sps:$4 sm:$0xff]   ;;  %v2234_v63 = vld [vmem:[#allocation2 + $0x180] ss:$16 sps:$4 sm:$0xff]   ;;  %v2289_v38 = vld [vmem:[#allocation2 + $0x26c] ss:$16 sps:$4 sm:$0xff]  }
 0x17c   :  { %1377 = vmatpush1.bf16.msra.mxu1 %v2199_v39  ;;  %1337 = vmatprep.subr.bf16.mxu0 %v2200_v40  ;;  %v2232_v62 = vld [vmem:[#allocation2 + $0x384] ss:$16 sps:$4 sm:$0xff]   ;;  %v2235_v0 = vld [vmem:[#allocation2 + $0x380] ss:$16 sps:$4 sm:$0xff]   ;;  %v2284_v39 = vld [vmem:[#allocation2 + $0x68] ss:$16 sps:$4 sm:$0xff]  }
 0x17d   :  { %1378 = vmatprep.subr.bf16.mxu1 %v2202_v41  ;;  %v2236_v1 = vld [vmem:[#allocation2 + $0x164] ss:$16 sps:$4 sm:$0xff]   ;;  %v2240_v3 = vld [vmem:[#allocation2 + $0x160] ss:$16 sps:$4 sm:$0xff]   ;;  %v2295_v40 = vld [vmem:[#allocation2 + $0x24c] ss:$16 sps:$4 sm:$0xff]  }
 0x17e   :  { %v2238_v2 = vld [vmem:[#allocation2 + $0x364] ss:$16 sps:$4 sm:$0xff]   ;;  %v2241_v4 = vld [vmem:[#allocation2 + $0x360] ss:$16 sps:$4 sm:$0xff]   ;;  %v2290_v41 = vld [vmem:[#allocation2 + $0x48] ss:$16 sps:$4 sm:$0xff]  }
 0x17f   :  { %1338 = vmatpush1.bf16.msra.mxu0 %v2204_v42  ;;  %v2242_v5 = vld [vmem:[#allocation2 + $0x144] ss:$16 sps:$4 sm:$0xff]   ;;  %v2246_v7 = vld [vmem:[#allocation2 + $0x140] ss:$16 sps:$4 sm:$0xff]   ;;  %v2293_v42 = vld [vmem:[#allocation2 + $0x248] ss:$16 sps:$4 sm:$0xff]  }
 0x180   :  { %1379 = vmatpush1.bf16.msra.mxu1 %v2205_v43  ;;  %1339 = vmatprep.subr.bf16.mxu0 %v2206_v44  ;;  %v2244_v6 = vld [vmem:[#allocation2 + $0x344] ss:$16 sps:$4 sm:$0xff]   ;;  %v2247_v8 = vld [vmem:[#allocation2 + $0x340] ss:$16 sps:$4 sm:$0xff]   ;;  %v2298_v43 = vld [vmem:[#allocation2 + $0x2c] ss:$16 sps:$4 sm:$0xff]  }
 0x181   :  { %1380 = vmatprep.subr.bf16.mxu1 %v2208_v45  ;;  %v2248_v9 = vld [vmem:[#allocation2 + $0x124] ss:$16 sps:$4 sm:$0xff]   ;;  %v2252_v13 = vld [vmem:[#allocation2 + $0x120] ss:$16 sps:$4 sm:$0xff]   ;;  %v2301_v44 = vld [vmem:[#allocation2 + $0x22c] ss:$16 sps:$4 sm:$0xff]  }
 0x182   :  { %v2250_v12 = vld [vmem:[#allocation2 + $0x324] ss:$16 sps:$4 sm:$0xff]   ;;  %v2253_v16 = vld [vmem:[#allocation2 + $0x320] ss:$16 sps:$4 sm:$0xff]   ;;  %v2296_v45 = vld [vmem:[#allocation2 + $0x28] ss:$16 sps:$4 sm:$0xff]  }
 0x183   :  { %1340 = vmatpush1.bf16.msra.mxu0 %v2210_v46  ;;  %v2254_v17 = vld [vmem:[#allocation2 + $0x104] ss:$16 sps:$4 sm:$0xff]   ;;  %v2258_v19 = vld [vmem:[#allocation2 + $0x100] ss:$16 sps:$4 sm:$0xff]   ;;  %v2299_v46 = vld [vmem:[#allocation2 + $0x228] ss:$16 sps:$4 sm:$0xff]  }
 0x184   :  { %1381 = vmatpush1.bf16.msra.mxu1 %v2211_v47  ;;  %1341 = vmatprep.subr.bf16.mxu0 %v2212_v48  ;;  %v2256_v18 = vld [vmem:[#allocation2 + $0x304] ss:$16 sps:$4 sm:$0xff]   ;;  %v2259_v20 = vld [vmem:[#allocation2 + $0x300] ss:$16 sps:$4 sm:$0xff]   ;;  %v2304_v47 = vld [vmem:[#allocation2 + $0xc] ss:$16 sps:$4 sm:$0xff]  }
 0x185   :  { %1382 = vmatprep.subr.bf16.mxu1 %v2214_v49  ;;  %v2307_v48 = vld [vmem:[#allocation2 + $0x20c] ss:$16 sps:$4 sm:$0xff]   ;;  %v2302_v49 = vld [vmem:[#allocation2 + $0x8] ss:$16 sps:$4 sm:$0xff]  }
 0x187   :  { %1342 = vmatpush2.bf16.msra.mxu0 %v2216_v50  ;;  %v2305_v50 = vld [vmem:[#allocation2 + $0x208] ss:$16 sps:$4 sm:$0xff]  }
 0x188   :  { %1383 = vmatpush2.bf16.msra.mxu1 %v2217_v51  ;;  %1343 = vmatprep.subr.bf16.mxu0 %v2218_v53  ;;  %v2310_v51 = vld [vmem:[#allocation2 + $0x1ec] ss:$16 sps:$4 sm:$0xff]  }
 0x189   :  { %1384 = vmatprep.subr.bf16.mxu1 %v2220_v54  ;;  %v2313_v53 = vld [vmem:[#allocation2 + $0x3ec] ss:$16 sps:$4 sm:$0xff]   ;;  %v2308_v54 = vld [vmem:[#allocation2 + $0x1e8] ss:$16 sps:$4 sm:$0xff]  }
 0x18b   :  { %1344 = vmatpush2.bf16.msra.mxu0 %v2222_v55  ;;  %v2311_v55 = vld [vmem:[#allocation2 + $0x3e8] ss:$16 sps:$4 sm:$0xff]  }
 0x18c   :  { %1385 = vmatpush2.bf16.msra.mxu1 %v2223_v56  ;;  %1345 = vmatprep.subr.bf16.mxu0 %v2224_v57  ;;  %v2316_v56 = vld [vmem:[#allocation2 + $0x1cc] ss:$16 sps:$4 sm:$0xff]  }
 0x18d   :  { %1386 = vmatprep.subr.bf16.mxu1 %v2226_v58  ;;  %v2319_v57 = vld [vmem:[#allocation2 + $0x3cc] ss:$16 sps:$4 sm:$0xff]   ;;  %v2314_v58 = vld [vmem:[#allocation2 + $0x1c8] ss:$16 sps:$4 sm:$0xff]  }
 0x18f   :  { %1346 = vmatpush2.bf16.msra.mxu0 %v2228_v59  ;;  %v2317_v59 = vld [vmem:[#allocation2 + $0x3c8] ss:$16 sps:$4 sm:$0xff]  }
 0x190   :  { %1387 = vmatpush2.bf16.msra.mxu1 %v2229_v60  ;;  %1347 = vmatprep.subr.bf16.mxu0 %v2230_v61  ;;  %v2322_v60 = vld [vmem:[#allocation2 + $0x1ac] ss:$16 sps:$4 sm:$0xff]  }
 0x191   :  { %1388 = vmatprep.subr.bf16.mxu1 %v2232_v62  ;;  %v2325_v61 = vld [vmem:[#allocation2 + $0x3ac] ss:$16 sps:$4 sm:$0xff]   ;;  %v2320_v62 = vld [vmem:[#allocation2 + $0x1a8] ss:$16 sps:$4 sm:$0xff]  }
 0x193   :  { %1348 = vmatpush2.bf16.msra.mxu0 %v2234_v63  ;;  %v2323_v63 = vld [vmem:[#allocation2 + $0x3a8] ss:$16 sps:$4 sm:$0xff]  }
 0x194   :  { %1389 = vmatpush2.bf16.msra.mxu1 %v2235_v0  ;;  %1349 = vmatprep.subr.bf16.mxu0 %v2236_v1  ;;  %v2328_v0 = vld [vmem:[#allocation2 + $0x18c] ss:$16 sps:$4 sm:$0xff]  }
 0x195   :  { %1390 = vmatprep.subr.bf16.mxu1 %v2238_v2  ;;  %v2331_v1 = vld [vmem:[#allocation2 + $0x38c] ss:$16 sps:$4 sm:$0xff]   ;;  %v2326_v2 = vld [vmem:[#allocation2 + $0x188] ss:$16 sps:$4 sm:$0xff]  }
 0x197   :  { %1350 = vmatpush2.bf16.msra.mxu0 %v2240_v3  ;;  %v2329_v3 = vld [vmem:[#allocation2 + $0x388] ss:$16 sps:$4 sm:$0xff]  }
 0x198   :  { %1391 = vmatpush2.bf16.msra.mxu1 %v2241_v4  ;;  %1351 = vmatprep.subr.bf16.mxu0 %v2242_v5  ;;  %v2334_v4 = vld [vmem:[#allocation2 + $0x16c] ss:$16 sps:$4 sm:$0xff]  }
 0x199   :  { %1392 = vmatprep.subr.bf16.mxu1 %v2244_v6  ;;  %v2337_v5 = vld [vmem:[#allocation2 + $0x36c] ss:$16 sps:$4 sm:$0xff]   ;;  %v2332_v6 = vld [vmem:[#allocation2 + $0x168] ss:$16 sps:$4 sm:$0xff]  }
 0x19b   :  { %1352 = vmatpush2.bf16.msra.mxu0 %v2246_v7  ;;  %v2335_v7 = vld [vmem:[#allocation2 + $0x368] ss:$16 sps:$4 sm:$0xff]  }
 0x19c   :  { %1393 = vmatpush2.bf16.msra.mxu1 %v2247_v8  ;;  %1353 = vmatprep.subr.bf16.mxu0 %v2248_v9  ;;  %v2340_v8 = vld [vmem:[#allocation2 + $0x14c] ss:$16 sps:$4 sm:$0xff]  }
 0x19d   :  { %1394 = vmatprep.subr.bf16.mxu1 %v2250_v12  ;;  %v2343_v9 = vld [vmem:[#allocation2 + $0x34c] ss:$16 sps:$4 sm:$0xff]   ;;  %v2338_v12 = vld [vmem:[#allocation2 + $0x148] ss:$16 sps:$4 sm:$0xff]  }
 0x19f   :  { %1354 = vmatpush2.bf16.msra.mxu0 %v2252_v13  ;;  %v2341_v13 = vld [vmem:[#allocation2 + $0x348] ss:$16 sps:$4 sm:$0xff]  }
 0x1a0   :  { %1395 = vmatpush2.bf16.msra.mxu1 %v2253_v16  ;;  %1355 = vmatprep.subr.bf16.mxu0 %v2254_v17  ;;  %v2346_v16 = vld [vmem:[#allocation2 + $0x12c] ss:$16 sps:$4 sm:$0xff]  }
 0x1a1   :  { %1396 = vmatprep.subr.bf16.mxu1 %v2256_v18  ;;  %v2349_v17 = vld [vmem:[#allocation2 + $0x32c] ss:$16 sps:$4 sm:$0xff]   ;;  %v2344_v18 = vld [vmem:[#allocation2 + $0x128] ss:$16 sps:$4 sm:$0xff]  }
 0x1a3   :  { %1356 = vmatpush2.bf16.msra.mxu0 %v2258_v19  ;;  %v2347_v19 = vld [vmem:[#allocation2 + $0x328] ss:$16 sps:$4 sm:$0xff]  }
 0x1a4   :  { %1397 = vmatpush2.bf16.msra.mxu1 %v2259_v20  ;;  %1407 = vmatprep.subr.bf16.mxu0 %v2262_v21  ;;  %v2352_v20 = vld [vmem:[#allocation2 + $0x10c] ss:$16 sps:$4 sm:$0xff]  }
 0x1a5   :  { %1448 = vmatprep.subr.bf16.mxu1 %v2265_v22  ;;  %v2355_v21 = vld [vmem:[#allocation2 + $0x30c] ss:$16 sps:$4 sm:$0xff]   ;;  %v2350_v22 = vld [vmem:[#allocation2 + $0x108] ss:$16 sps:$4 sm:$0xff]  }
 0x1a6   :  { %1358 = vmatmul.mubr.bf16.vlgmr.msra.gmra.mxu0 %v2550_v10 }
 0x1a7   :  { %1399 = vmatmul.mubr.bf16.vlgmr.msra.gmra.mxu1 %v2552_v11  ;;  %1408 = vmatpush1.bf16.msra.mxu0 %v2260_v23  ;;  %v2353_v23 = vld [vmem:[#allocation2 + $0x308] ss:$16 sps:$4 sm:$0xff]  }
 0x1a8   :  { %1449 = vmatpush1.bf16.msra.mxu1 %v2263_v24  ;;  %1409 = vmatprep.subr.bf16.mxu0 %v2268_v25  ;;  %v666_v24 = vshrl.u32 %v78_v52, 7 }
 0x1a9   :  { %1450 = vmatprep.subr.bf16.mxu1 %v2271_v26  ;;  %1439 = vmatprep.mubr.bf16.mxu0 %v2554_v14  ;;  %v2287_v14 = vld [vmem:[#allocation2 + $0x268] ss:$16 sps:$4 sm:$0xff]   ;;  %v663_v26 = vld [vmem:[%s2587_s5] sm:$0xf] }
 0x1aa   :  { %1480 = vmatprep.mubr.bf16.mxu1 %v2556_v15  ;;  %v2292_v15 = vld [vmem:[#allocation2 + $0x4c] ss:$16 sps:$4 sm:$0xff]   ;;  %v667_v25 = vsub.s32 0, %v666_v24 }
 0x1ab   :  { %1410 = vmatpush1.bf16.msra.mxu0 %v2266_v27  ;;  %v671_v27 = vsub.s32 1, %v666_v24 }
 0x1ac   :  { %1451 = vmatpush1.bf16.msra.mxu1 %v2269_v28  ;;  %1411 = vmatprep.subr.bf16.mxu0 %v2274_v29  ;;  %v668_v28 = vrot.slane %v663_v26, %v667_v25 }
 0x1ad   :  { %1452 = vmatprep.subr.bf16.mxu1 %v2277_v30  ;;  %v672_v29 = vrot.slane %v663_v26, %v671_v27 }
 0x1af   :  { %1412 = vmatpush1.bf16.msra.mxu0 %v2272_v31 }
 0x1b0   :  { %1453 = vmatpush1.bf16.msra.mxu1 %v2275_v32  ;;  %1413 = vmatprep.subr.bf16.mxu0 %v2280_v33 }
 0x1b1   :  { %1454 = vmatprep.subr.bf16.mxu1 %v2283_v34 }
 0x1b3   :  { %1414 = vmatpush1.bf16.msra.mxu0 %v2278_v35 }
 0x1b4   :  { %1455 = vmatpush1.bf16.msra.mxu1 %v2281_v36  ;;  %1415 = vmatprep.subr.bf16.mxu0 %v2286_v37 }
 0x1b5   :  { %1456 = vmatprep.subr.bf16.mxu1 %v2289_v38 }
 0x1b7   :  { %1416 = vmatpush1.bf16.msra.mxu0 %v2284_v39 }
 0x1b8   :  { %1457 = vmatpush1.bf16.msra.mxu1 %v2287_v14  ;;  %1417 = vmatprep.subr.bf16.mxu0 %v2292_v15 }
 0x1b9   :  { %1458 = vmatprep.subr.bf16.mxu1 %v2295_v40 }
 0x1bb   :  { %1418 = vmatpush1.bf16.msra.mxu0 %v2290_v41  ;;  %v675_v41 = vsub.s32 2, %v666_v24 }
 0x1bc   :  { %1459 = vmatpush1.bf16.msra.mxu1 %v2293_v42  ;;  %1419 = vmatprep.subr.bf16.mxu0 %v2298_v43  ;;  %v679_v42 = vsub.s32 3, %v666_v24 }
 0x1bd   :  { %1460 = vmatprep.subr.bf16.mxu1 %v2301_v44  ;;  %v676_v43 = vrot.slane %v663_v26, %v675_v41 }
 0x1be   :  { %v680_v44 = vrot.slane %v663_v26, %v679_v42 }
 0x1bf   :  { %1420 = vmatpush1.bf16.msra.mxu0 %v2296_v45 }
 0x1c0   :  { %1461 = vmatpush1.bf16.msra.mxu1 %v2299_v46  ;;  %1421 = vmatprep.subr.bf16.mxu0 %v2304_v47 }
 0x1c1   :  { %1462 = vmatprep.subr.bf16.mxu1 %v2307_v48 }
 0x1c3   :  { %1422 = vmatpush1.bf16.msra.mxu0 %v2302_v49 }
 0x1c4   :  { %1463 = vmatpush1.bf16.msra.mxu1 %v2305_v50  ;;  %1423 = vmatprep.subr.bf16.mxu0 %v2310_v51 }
 0x1c5   :  { %1464 = vmatprep.subr.bf16.mxu1 %v2313_v53 }
 0x1c7   :  { %1424 = vmatpush2.bf16.msra.mxu0 %v2308_v54 }
 0x1c8   :  { %1465 = vmatpush2.bf16.msra.mxu1 %v2311_v55  ;;  %1425 = vmatprep.subr.bf16.mxu0 %v2316_v56 }
 0x1c9   :  { %1466 = vmatprep.subr.bf16.mxu1 %v2319_v57 }
 0x1cb   :  { %1426 = vmatpush2.bf16.msra.mxu0 %v2314_v58 }
 0x1cc   :  { %1467 = vmatpush2.bf16.msra.mxu1 %v2317_v59  ;;  %1427 = vmatprep.subr.bf16.mxu0 %v2322_v60 }
 0x1cd   :  { %1468 = vmatprep.subr.bf16.mxu1 %v2325_v61 }
 0x1cf   :  { %1428 = vmatpush2.bf16.msra.mxu0 %v2320_v62 }
 0x1d0   :  { %1469 = vmatpush2.bf16.msra.mxu1 %v2323_v63  ;;  %1429 = vmatprep.subr.bf16.mxu0 %v2328_v0 }
 0x1d1   :  { %1470 = vmatprep.subr.bf16.mxu1 %v2331_v1 }
 0x1d3   :  { %1430 = vmatpush2.bf16.msra.mxu0 %v2326_v2 }
 0x1d4   :  { %1471 = vmatpush2.bf16.msra.mxu1 %v2329_v3  ;;  %1431 = vmatprep.subr.bf16.mxu0 %v2334_v4 }
 0x1d5   :  { %1472 = vmatprep.subr.bf16.mxu1 %v2337_v5 }
 0x1d7   :  { %1432 = vmatpush2.bf16.msra.mxu0 %v2332_v6 }
 0x1d8   :  { %1473 = vmatpush2.bf16.msra.mxu1 %v2335_v7  ;;  %1433 = vmatprep.subr.bf16.mxu0 %v2340_v8 }
 0x1d9   :  { %1474 = vmatprep.subr.bf16.mxu1 %v2343_v9 }
 0x1db   :  { %1434 = vmatpush2.bf16.msra.mxu0 %v2338_v12 }
 0x1dc   :  { %1475 = vmatpush2.bf16.msra.mxu1 %v2341_v13  ;;  %1435 = vmatprep.subr.bf16.mxu0 %v2346_v16 }
 0x1dd   :  { %1476 = vmatprep.subr.bf16.mxu1 %v2349_v17 }
 0x1df   :  { %1436 = vmatpush2.bf16.msra.mxu0 %v2344_v18 }
 0x1e0   :  { %1477 = vmatpush2.bf16.msra.mxu1 %v2347_v19  ;;  %1437 = vmatprep.subr.bf16.mxu0 %v2352_v20 }
 0x1e1   :  { %1478 = vmatprep.subr.bf16.mxu1 %v2355_v21 }
 0x1e3   :  { %1438 = vmatpush2.bf16.msra.mxu0 %v2350_v22 }
 0x1e4   :  { %1479 = vmatpush2.bf16.msra.mxu1 %v2353_v23 }
 0x1e6   :  { %1440 = vmatmul.mubr.bf16.vlgmr.msra.gmra.mxu0 %v2550_v10 }
 0x1e7   :  { %1481 = vmatmul.mubr.bf16.vlgmr.msra.gmra.mxu1 %v2552_v11 }
 0x266   :  { %v1359_v30 = vpop.f32.mrf.mxu0 }
 0x267   :  { %v1400_v31 = vpop.f32.mrf.mxu1  ;;  %v1360_v32 = vadd.f32 %v1359_v30, %v668_v28 }
 0x268   :  { %v1361_v33 = vpop.f32.mrf.mxu0 }
 0x269   :  { %v1402_v34 = vpop.f32.mrf.mxu1  ;;  %v1401_v35 = vadd.f32 %v1400_v31, %v1360_v32  ;;  %v1362_v36 = vadd.f32 %v1361_v33, %v672_v29 }
 0x26a   :  { %v1363_v10 = vpop.f32.mrf.mxu0 }
 0x26b   :  { %v1404_v37 = vpop.f32.mrf.mxu1  ;;  %v1489_v11 = vmax.f32 %v1401_v35, 0.0  ;;  %v1403_v38 = vadd.f32 %v1402_v34, %v1362_v36 }
 0x26c   :  { %v1364_v52 = vpop.f32.mrf.mxu0 }
 0x26d   :  { %v1405_v39 = vpop.f32.mrf.mxu1  ;;  %v2570_v14 = vpack.c.bf16 %v1489_v11, %v1489_v11  ;;  %v1490_v15 = vmax.f32 %v1403_v38, 0.0 }
 0x26f   :  { %v1494_v40 = vpack.c.bf16 %v1490_v15, %v1490_v15 }
 0x2a6   :  { %v1441_v45 = vpop.f32.mrf.mxu0 }
 0x2a7   :  { %v1482_v46 = vpop.f32.mrf.mxu1  ;;  %v1442_v47 = vadd.f32 %v1441_v45, %v676_v43 }
 0x2a8   :  { %v1443_v48 = vpop.f32.mrf.mxu0 }
 0x2a9   :  { %v1484_v49 = vpop.f32.mrf.mxu1  ;;  %v1483_v50 = vadd.f32 %v1482_v46, %v1442_v47  ;;  %v1444_v51 = vadd.f32 %v1443_v48, %v680_v44 }
 0x2aa   :  { %v1445_v53 = vpop.f32.mrf.mxu0 }
 0x2ab   :  { %v1486_v54 = vpop.f32.mrf.mxu1  ;;  %v1491_v55 = vmax.f32 %v1483_v50, 0.0  ;;  %v1485_v56 = vadd.f32 %v1484_v49, %v1444_v51 }
 0x2ac   :  { %v1446_v57 = vpop.f32.mrf.mxu0 }
 0x2ad   :  { %v1487_v58 = vpop.f32.mrf.mxu1  ;;  %v2572_v59 = vpack.c.bf16 %v1491_v55, %v1491_v55  ;;  %v1492_v60 = vmax.f32 %v1485_v56, 0.0 }
 0x2af   :  { %v1496_v61 = vpack.c.bf16 %v1492_v60, %v1492_v60 }
 0x2b0   :  { %2474 = dma.done.wait [#allocation4 + $0x1], 4096 }
 0x2b1   :  { %2475 = vsyncadd [#allocation4 + $0x1], 4294963200  ;;  %1795 = vmatprep.mubr.bf16.mxu0 %v1494_v40  ;;  %1835 = vmatprep.mubr.bf16.mxu1 %v1496_v61  ;;  %v2356_v62 = vld [vmem:[#allocation3 + $0x78] sm:$0xff]   ;;  %v2360_v2 = vld [vmem:[#allocation3 + $0x70] sm:$0xff]  }
 0x2b2   :  { %v2357_v63 = vld [vmem:[#allocation3 + $0xf8] sm:$0xff]   ;;  %2061 = vmatprep.subr.bf16.mxu0 %v2356_v62  ;;  %v2361_v3 = vld [vmem:[#allocation3 + $0xf0] sm:$0xff]   ;;  %v2364_v6 = vld [vmem:[#allocation3 + $0x68] sm:$0xff]  }
 0x2b3   :  { %v2358_v0 = vld [vmem:[#allocation3 + $0x38] sm:$0xff]   ;;  %2083 = vmatprep.subr.bf16.mxu1 %v2357_v63  ;;  %v2362_v4 = vld [vmem:[#allocation3 + $0x30] sm:$0xff]   ;;  %v2365_v7 = vld [vmem:[#allocation3 + $0xe8] sm:$0xff]  }
 0x2b4   :  { %v2359_v1 = vld [vmem:[#allocation3 + $0xb8] sm:$0xff]   ;;  %2062 = vmatpush3.bf16.msra.mxu0 %v2358_v0  ;;  %v2363_v5 = vld [vmem:[#allocation3 + $0xb0] sm:$0xff]   ;;  %v2366_v8 = vld [vmem:[#allocation3 + $0x28] sm:$0xff]  }
 0x2b5   :  { %2084 = vmatpush3.bf16.msra.mxu1 %v2359_v1  ;;  %2063 = vmatprep.subr.bf16.mxu0 %v2360_v2  ;;  %v2367_v9 = vld [vmem:[#allocation3 + $0xa8] sm:$0xff]   ;;  %v2368_v12 = vld [vmem:[#allocation3 + $0x60] sm:$0xff]   ;;  %v2372_v18 = vld [vmem:[#allocation3 + $0x58] sm:$0xff]  }
 0x2b6   :  { %2085 = vmatprep.subr.bf16.mxu1 %v2361_v3  ;;  %v2369_v13 = vld [vmem:[#allocation3 + $0xe0] sm:$0xff]   ;;  %v2373_v19 = vld [vmem:[#allocation3 + $0xd8] sm:$0xff]   ;;  %v2376_v22 = vld [vmem:[#allocation3 + $0x50] sm:$0xff]  }
 0x2b7   :  { %v2370_v16 = vld [vmem:[#allocation3 + $0x20] sm:$0xff]   ;;  %v2374_v20 = vld [vmem:[#allocation3 + $0x18] sm:$0xff]   ;;  %v2377_v23 = vld [vmem:[#allocation3 + $0xd0] sm:$0xff]  }
 0x2b8   :  { %2064 = vmatpush3.bf16.msra.mxu0 %v2362_v4  ;;  %v2371_v17 = vld [vmem:[#allocation3 + $0xa0] sm:$0xff]   ;;  %v2375_v21 = vld [vmem:[#allocation3 + $0x98] sm:$0xff]   ;;  %v2378_v24 = vld [vmem:[#allocation3 + $0x10] sm:$0xff]  }
 0x2b9   :  { %2086 = vmatpush3.bf16.msra.mxu1 %v2363_v5  ;;  %2065 = vmatprep.subr.bf16.mxu0 %v2364_v6  ;;  %v2379_v25 = vld [vmem:[#allocation3 + $0x90] sm:$0xff]   ;;  %v2380_v26 = vld [vmem:[#allocation3 + $0x48] sm:$0xff]   ;;  %v2384_v30 = vld [vmem:[#allocation3 + $0x40] sm:$0xff]  }
 0x2ba   :  { %2087 = vmatprep.subr.bf16.mxu1 %v2365_v7  ;;  %v2381_v27 = vld [vmem:[#allocation3 + $0xc8] sm:$0xff]   ;;  %v2385_v31 = vld [vmem:[#allocation3 + $0xc0] sm:$0xff]  }
 0x2bb   :  { %v2382_v28 = vld [vmem:[#allocation3 + $0x8] sm:$0xff]   ;;  %v2386_v32 = vld [vmem:[#allocation3] sm:$0xff]  }
 0x2bc   :  { %2066 = vmatpush3.bf16.msra.mxu0 %v2366_v8  ;;  %v2383_v29 = vld [vmem:[#allocation3 + $0x88] sm:$0xff]   ;;  %v2387_v33 = vld [vmem:[#allocation3 + $0x80] sm:$0xff]  }
 0x2bd   :  { %2088 = vmatpush3.bf16.msra.mxu1 %v2367_v9  ;;  %2067 = vmatprep.subr.bf16.mxu0 %v2368_v12  ;;  %v2026_v36 = vld [vmem:[%s2589_s7] ss:$0 sm:$0xff] }
 0x2be   :  { %2089 = vmatprep.subr.bf16.mxu1 %v2369_v13 }
 0x2c0   :  { %2068 = vmatpush3.bf16.msra.mxu0 %v2370_v16 }
 0x2c1   :  { %2090 = vmatpush3.bf16.msra.mxu1 %v2371_v17  ;;  %2069 = vmatprep.subr.bf16.mxu0 %v2372_v18 }
 0x2c2   :  { %2091 = vmatprep.subr.bf16.mxu1 %v2373_v19 }
 0x2c4   :  { %2070 = vmatpush3.bf16.msra.mxu0 %v2374_v20 }
 0x2c5   :  { %2092 = vmatpush3.bf16.msra.mxu1 %v2375_v21  ;;  %2071 = vmatprep.subr.bf16.mxu0 %v2376_v22 }
 0x2c6   :  { %2093 = vmatprep.subr.bf16.mxu1 %v2377_v23 }
 0x2c8   :  { %2072 = vmatpush3.bf16.msra.mxu0 %v2378_v24 }
 0x2c9   :  { %2094 = vmatpush3.bf16.msra.mxu1 %v2379_v25  ;;  %2073 = vmatprep.subr.bf16.mxu0 %v2380_v26 }
 0x2ca   :  { %2095 = vmatprep.subr.bf16.mxu1 %v2381_v27 }
 0x2cc   :  { %2074 = vmatpush3.bf16.msra.mxu0 %v2382_v28 }
 0x2cd   :  { %2096 = vmatpush3.bf16.msra.mxu1 %v2383_v29  ;;  %2075 = vmatprep.subr.bf16.mxu0 %v2384_v30 }
 0x2ce   :  { %2097 = vmatprep.subr.bf16.mxu1 %v2385_v31 }
 0x2d0   :  { %2076 = vmatpush3.bf16.msra.mxu0 %v2386_v32 }
 0x2d1   :  { %2098 = vmatpush3.bf16.msra.mxu1 %v2387_v33 }
 0x2d3   :  { %1796 = vmatmul.mubr.bf16.vlgmr.msra.gmra.mxu0 %v2570_v14 }
 0x2d4   :  { %1836 = vmatmul.mubr.bf16.vlgmr.msra.gmra.mxu1 %v2572_v59 }
 0x393   :  { %v2077_v34 = vpop.f32.mrf.mxu0 }
 0x394   :  { %v2099_v35 = vpop.f32.mrf.mxu1 }
 0x395   :  { %v2078_v10 = vpop.f32.mrf.mxu0 }
 0x396   :  { %v2079_v37 = vadd.f32 %v2078_v10, %v2077_v34  ;;  %v2100_v11 = vpop.f32.mrf.mxu1 }
 0x397   :  { %v2080_v38 = vpop.f32.mrf.mxu0  ;;  %v2101_v39 = vadd.f32 %v2100_v11, %v2099_v35 }
 0x398   :  { %v1798_v52 = vadd.f32 %v2079_v37, %v2026_v36  ;;  %v2102_v15 = vpop.f32.mrf.mxu1 }
 0x399   :  { %v2081_v40 = vpop.f32.mrf.mxu0 }
 0x39a   :  { %v1838_v41 = vadd.f32 %v2101_v39, %v1798_v52  ;;  %v2103_v42 = vpop.f32.mrf.mxu1 }
 0x39c   :  { %1843 = vst [vmem:[%s2590_s8] sm:$0xff] %v1838_v41 }
 0x39d   :  { %1848 = vsyncpa [#allocation6], 1 }
 0x39e   :  { %1849 = vsyncpa [#allocation8], 1 }
 0x39f   :  { %1850 = vsyncmov [#allocation4] }
 0x3a2   :  { %s1851_s10 = vpop.sfrf %1850 }
 0x3a3   :  { %p2059_p6 = scmp.ne.s32.totalorder %s1851_s10, 0 }
 0x3a5   :  { %1855 = shalt.err (%p2059_p6)  }
 0x3a6   :  { %1857 = vsyncmov [#allocation4 + $0x1] }
 0x3a9   :  { %s1858_s7 = vpop.sfrf %1857 }
 0x3aa   :  { %p2060_p7 = scmp.ne.s32.totalorder %s1858_s7, 0 }
 0x3ac   :  { %1862 = shalt.err (%p2060_p7)  }

</bundles_post_ra>
